<compile_context>
chip_gen: v7x
topology: tpu7x:2x2x1
jax: 0.10.0
libtpu: 0.0.40
codegen_flags: <defaults>
</compile_context>

<pallas_src>
import jax
import jax.numpy as jnp
from jax import lax
from jax.experimental import pallas as pl
from jax.experimental.pallas import tpu as pltpu


# True layer widths of VideoViewsPredictor.
LAYER_DIMS = [256, 128, 64, 32, 16, 8, 4, 2, 1]

# (padded_in, padded_out) for layers 3..9 (container is zero-filled, so padding is inert).
_TAIL_DIMS = ((128, 64), (64, 32), (32, 16), (16, 8), (8, 8), (8, 8), (8, 8))


def _round_up(a, m):
    return ((a + m - 1) // m) * m


def _mlp_kernel(x_ref, w1_ref, w2_ref, wt_ref, b_ref, out_ref):
    """Fused 9-layer MLP, transposed orientation.

    x_ref : (bt, F)       input dtype (cast to bf16 here)
    w1_ref: (256, F)      bf16   (= W1^T)
    w2_ref: (128, 256)    bf16   (= W2^T)
    wt_ref: (7, 64, 128)  bf16   (zero-padded W3^T..W9^T)
    b_ref : (256, 9)      f32    (column l = bias of layer l+1, zero-padded)
    out_ref:(8, bt)       f32    (row 0 = real output, rows 1-7 exact zeros)
    """
    dn_abt = (((1,), (1,)), ((), ()))  # A @ B^T  (contract minor dims of both)
    dn_ab = (((1,), (0,)), ((), ()))   # A @ B

    xb = x_ref[...].astype(jnp.bfloat16)                         # (bt, F)

    # ---- layer 1: h1^T = relu(W1^T @ x^T + b1) -> (256, bt) ----
    a = lax.dot_general(w1_ref[...], xb, dn_abt,
                        preferred_element_type=jnp.float32)
    a = a + b_ref[:, 0:1]
    h = jnp.maximum(a.astype(jnp.bfloat16), 0)

    # ---- layer 2: (128, bt) ----
    a = lax.dot_general(w2_ref[...], h, dn_ab,
                        preferred_element_type=jnp.float32)
    a = a + b_ref[:128, 1:2]
    h = jnp.maximum(a.astype(jnp.bfloat16), 0)

    # ---- layers 3..9 (last layer has no ReLU) ----
    for i, (pin, pout) in enumerate(_TAIL_DIMS):
        w = wt_ref[i, :pout, :pin]                                # (pout, pin) bf16
        a = lax.dot_general(w, h, dn_ab,
                            preferred_element_type=jnp.float32)   # (pout, bt)
        a = a + b_ref[:pout, i + 2:i + 3]
        if i + 1 < len(_TAIL_DIMS):
            h = jnp.maximum(a.astype(jnp.bfloat16), 0)

    out_ref[...] = a.astype(out_ref.dtype)                        # (8, bt)


def _pack_params(params):
    """Pack 9 (W, b) pairs into 4 arrays (one-time; hoist out of hot loops if desired)."""
    w1, b1 = params[0]
    w2, b2 = params[1]
    w1t = jnp.asarray(w1).T.astype(jnp.bfloat16)                  # (256, F)
    w2t = jnp.asarray(w2).T.astype(jnp.bfloat16)                  # (128, 256)
    wtail = jnp.zeros((7, 64, 128), jnp.bfloat16)
    ball = jnp.zeros((256, 9), jnp.float32)
    ball = ball.at[:256, 0].set(jnp.asarray(b1).reshape(-1).astype(jnp.float32))
    ball = ball.at[:128, 1].set(jnp.asarray(b2).reshape(-1).astype(jnp.float32))
    for i in range(7):
        w, b = params[i + 2]
        d_in, d_out = w.shape
        wtail = wtail.at[i, :d_out, :d_in].set(jnp.asarray(w).T.astype(jnp.bfloat16))
        ball = ball.at[:d_out, i + 2].set(jnp.asarray(b).reshape(-1).astype(jnp.float32))
    return w1t, w2t, wtail, ball


def _vmem_estimate(bt, F, x_itemsize):
    lanes_f = _round_up(F, 128)
    x_buf = 2 * bt * lanes_f * x_itemsize                          # double-buffered x
    w_buf = 2 * (256 * lanes_f * 2 + 128 * 256 * 2
                 + 7 * 64 * 128 * 2 + 256 * 128 * 4)               # params (lane-padded)
    out_buf = 2 * 8 * bt * 4
    act = bt * 256 * 4 + bt * 256 * 2 + bt * 128 * 4               # f32 acc + bf16 act + slack
    return x_buf + w_buf + out_buf + act


def video_views_predictor(x, params, *, batch_tile=2048):
    """x: (B, F) float. params: list of 9 (W, b), W: (in, out), b: (1, out) or (out,)."""
    B, F = x.shape
    assert [w.shape[1] for (w, _) in params] == LAYER_DIMS
    assert params[0][0].shape[0] == F

    w1t, w2t, wtail, ball = _pack_params(params)

    # ---- pick the batch tile (multiple of 256 when tiling; VMEM-capped) ----
    batch_tile = max(256, (batch_tile // 256) * 256)
    b8 = _round_up(max(B, 1), 8)
    if b8 <= batch_tile:
        bt = b8                                   # single tile covers the whole batch
    else:
        bt = batch_tile
        while bt > 256 and _vmem_estimate(bt, F, x.dtype.itemsize) > 24 * 1024 * 1024:
            bt //= 2
    n_tiles = pl.cdiv(b8, bt)
    B_pad = n_tiles * bt

    # Batch-only zero pad, only when needed (no feature padding, no dtype pass over x).
    # TODO(synk): replace with a cdiv grid + masked edge tile if ragged batches matter.
    if B_pad != B:
        x_in = jnp.zeros((B_pad, F), x.dtype).at[:B, :].set(x)
    else:
        x_in = x

    in_specs = [
        pl.BlockSpec((bt, F), lambda i: (i, 0)),          # x: streamed per tile
        pl.BlockSpec((256, F), lambda i: (0, 0)),         # W1^T: constant-index (fetched once)
        pl.BlockSpec((128, 256), lambda i: (0, 0)),       # W2^T
        pl.BlockSpec((7, 64, 128), lambda i: (0, 0, 0)),  # packed tail weights
        pl.BlockSpec((256, 9), lambda i: (0, 0)),         # packed biases
    ]
    out_specs = pl.BlockSpec((8, bt), lambda i: (0, i))   # lane-dense output slab

    out = pl.pallas_call(
        _mlp_kernel,
        out_shape=jax.ShapeDtypeStruct((8, B_pad), jnp.float32),
        grid=(n_tiles,),
        in_specs=in_specs,
        out_specs=out_specs,
        compiler_params=pltpu.CompilerParams(
            dimension_semantics=("parallel",),
            vmem_limit_bytes=32 * 1024 * 1024,            # v5e scoped default is only 16 MiB
        ),
    )(x_in, w1t, w2t, wtail, ball)

    return out[0, :B][:, None]                            # (B, 1)


def init_params(key, number_of_features):
    """Deterministic init mimicking torch.nn.Linear default (uniform +/- 1/sqrt(fan_in))."""
    params = []
    in_dim = number_of_features
    for out_dim in LAYER_DIMS:
        key, kw, kb = jax.random.split(key, 3)
        bound = 1.0 / jnp.sqrt(jnp.float32(in_dim))
        w = jax.random.uniform(kw, (in_dim, out_dim), jnp.float32, -bound, bound)
        b = jax.random.uniform(kb, (1, out_dim), jnp.float32, -bound, bound)
        params.append((w, b))
        in_dim = out_dim
    return params


def reference_forward_bf16(x, params):
    """Pure-JAX reference mirroring the kernel's bf16-MXU / f32-accumulate path."""
    h = x.astype(jnp.bfloat16)
    a = None
    for i, (w, b) in enumerate(params):
        a = jnp.dot(h, w.astype(jnp.bfloat16), preferred_element_type=jnp.float32)
        a = a + jnp.asarray(b).reshape(1, -1).astype(jnp.float32)
        if i != len(params) - 1:
            h = jnp.maximum(a.astype(jnp.bfloat16), 0)
    return a


def reference_forward_f32(x, params):
    h = x
    for i, (w, b) in enumerate(params):
        h = h @ w + jnp.asarray(b).reshape(1, -1)
        if i != len(params) - 1:
            h = jnp.maximum(h, 0.0)
    return h


if __name__ == "__main__":
    key = jax.random.PRNGKey(0)
    number_of_features = 32
    batch = 8

    kx, kp = jax.random.split(key)
    x = jax.random.normal(kx, (batch, number_of_features), jnp.float32)
    params = init_params(kp, number_of_features)

    out = video_views_predictor(x, params)
    out = jax.block_until_ready(out)
    assert out.shape == (batch, 1), out.shape

    # Tight check against a reference using the same bf16-matmul / f32-accumulate math.
    ref_bf16 = reference_forward_bf16(x, params)
    assert jnp.allclose(out, ref_bf16, atol=5e-3, rtol=5e-3), (out, ref_bf16)

    # Loose sanity check against the full-f32 PyTorch-equivalent forward.
    ref_f32 = reference_forward_f32(x, params)
    assert jnp.allclose(out, ref_f32, atol=5e-2, rtol=5e-2), (out, ref_f32)

    print("KERNEL_OK")
</pallas_src>

<mosaic_0001>
module attributes {stable_mosaic.version = 11 : i64} {
  func.func @_mlp_kernel(%arg0: i32, %arg1: memref<8x32xf32, #tpu.memory_space<vmem>>, %arg2: memref<256x32xbf16, #tpu.memory_space<vmem>>, %arg3: memref<128x256xbf16, #tpu.memory_space<vmem>>, %arg4: memref<7x64x128xbf16, #tpu.memory_space<vmem>>, %arg5: memref<256x9xf32, #tpu.memory_space<vmem>>, %arg6: memref<8x8xf32, #tpu.memory_space<vmem>>) attributes {dimension_semantics = [#tpu.dimension_semantics<parallel>], iteration_bounds = array<i64: 1>, scalar_prefetch = 0 : i64, scratch_operands = 0 : i64, tpu.core_type = #tpu.core_type<tc>, window_params = [{transform_indices = @transform_0, window_bounds = array<i64: 8, 32>}, {pipeline_mode = #tpu.pipeline_mode<synchronous>, transform_indices = @transform_1, window_bounds = array<i64: 256, 32>}, {pipeline_mode = #tpu.pipeline_mode<synchronous>, transform_indices = @transform_2, window_bounds = array<i64: 128, 256>}, {pipeline_mode = #tpu.pipeline_mode<synchronous>, transform_indices = @transform_3, window_bounds = array<i64: 7, 64, 128>}, {pipeline_mode = #tpu.pipeline_mode<synchronous>, transform_indices = @transform_4, window_bounds = array<i64: 256, 9>}, {transform_indices = @transform_5, window_bounds = array<i64: 8, 8>}]} {
    %c0 = arith.constant 0 : index
    %c0_0 = arith.constant 0 : index
    %0 = vector.load %arg1[%c0, %c0_0] : memref<8x32xf32, #tpu.memory_space<vmem>>, vector<8x32xf32>
    %1 = arith.truncf %0 : vector<8x32xf32> to vector<8x32xbf16>
    %c0_1 = arith.constant 0 : index
    %c0_2 = arith.constant 0 : index
    %2 = vector.load %arg2[%c0_1, %c0_2] : memref<256x32xbf16, #tpu.memory_space<vmem>>, vector<256x32xbf16>
    %cst = arith.constant dense<0.000000e+00> : vector<256x8xf32>
    %3 = tpu.matmul %2, %1, %cst {dimension_numbers = #tpu.dot_dimension_numbers<[1], [1], [0], [0], [0, 0, 1, 0], [], []>} : vector<256x32xbf16>, vector<8x32xbf16>, vector<256x8xf32> -> vector<256x8xf32>
    %c0_3 = arith.constant 0 : index
    %c0_4 = arith.constant 0 : index
    %4 = vector.load %arg5[%c0_3, %c0_4] : memref<256x9xf32, #tpu.memory_space<vmem>>, vector<256x1xf32>
    %5 = vector.broadcast %4 : vector<256x1xf32> to vector<256x8xf32>
    %6 = arith.addf %3, %5 : vector<256x8xf32>
    %7 = arith.truncf %6 : vector<256x8xf32> to vector<256x8xbf16>
    %cst_5 = arith.constant 0.000000e+00 : bf16
    %8 = vector.broadcast %cst_5 : bf16 to vector<256x8xbf16>
    %9 = arith.maximumf %7, %8 : vector<256x8xbf16>
    %c0_6 = arith.constant 0 : index
    %c0_7 = arith.constant 0 : index
    %10 = vector.load %arg3[%c0_6, %c0_7] : memref<128x256xbf16, #tpu.memory_space<vmem>>, vector<128x256xbf16>
    %cst_8 = arith.constant dense<0.000000e+00> : vector<128x8xf32>
    %11 = tpu.matmul %10, %9, %cst_8 {dimension_numbers = #tpu.dot_dimension_numbers<[1], [0], [0], [1], [0, 0, 1, 1], [], []>} : vector<128x256xbf16>, vector<256x8xbf16>, vector<128x8xf32> -> vector<128x8xf32>
    %c0_9 = arith.constant 0 : index
    %c1 = arith.constant 1 : index
    %12 = vector.load %arg5[%c0_9, %c1] : memref<256x9xf32, #tpu.memory_space<vmem>>, vector<128x1xf32>
    %13 = vector.broadcast %12 : vector<128x1xf32> to vector<128x8xf32>
    %14 = arith.addf %11, %13 : vector<128x8xf32>
    %15 = arith.truncf %14 : vector<128x8xf32> to vector<128x8xbf16>
    %cst_10 = arith.constant 0.000000e+00 : bf16
    %16 = vector.broadcast %cst_10 : bf16 to vector<128x8xbf16>
    %17 = arith.maximumf %15, %16 : vector<128x8xbf16>
    %c0_11 = arith.constant 0 : index
    %c0_12 = arith.constant 0 : index
    %c0_13 = arith.constant 0 : index
    %18 = vector.load %arg4[%c0_11, %c0_12, %c0_13] : memref<7x64x128xbf16, #tpu.memory_space<vmem>>, vector<1x64x128xbf16>
    %19 = vector.shape_cast %18 : vector<1x64x128xbf16> to vector<64x128xbf16>
    %cst_14 = arith.constant dense<0.000000e+00> : vector<64x8xf32>
    %20 = tpu.matmul %19, %17, %cst_14 {dimension_numbers = #tpu.dot_dimension_numbers<[1], [0], [0], [1], [0, 0, 1, 1], [], []>} : vector<64x128xbf16>, vector<128x8xbf16>, vector<64x8xf32> -> vector<64x8xf32>
    %c0_15 = arith.constant 0 : index
    %c2 = arith.constant 2 : index
    %21 = vector.load %arg5[%c0_15, %c2] : memref<256x9xf32, #tpu.memory_space<vmem>>, vector<64x1xf32>
    %22 = vector.broadcast %21 : vector<64x1xf32> to vector<64x8xf32>
    %23 = arith.addf %20, %22 : vector<64x8xf32>
    %24 = arith.truncf %23 : vector<64x8xf32> to vector<64x8xbf16>
    %cst_16 = arith.constant 0.000000e+00 : bf16
    %25 = vector.broadcast %cst_16 : bf16 to vector<64x8xbf16>
    %26 = arith.maximumf %24, %25 : vector<64x8xbf16>
    %c1_17 = arith.constant 1 : index
    %c0_18 = arith.constant 0 : index
    %c0_19 = arith.constant 0 : index
    %27 = vector.load %arg4[%c1_17, %c0_18, %c0_19] : memref<7x64x128xbf16, #tpu.memory_space<vmem>>, vector<1x32x64xbf16>
    %28 = vector.shape_cast %27 : vector<1x32x64xbf16> to vector<32x64xbf16>
    %cst_20 = arith.constant dense<0.000000e+00> : vector<32x8xf32>
    %29 = tpu.matmul %28, %26, %cst_20 {dimension_numbers = #tpu.dot_dimension_numbers<[1], [0], [0], [1], [0, 0, 1, 1], [], []>} : vector<32x64xbf16>, vector<64x8xbf16>, vector<32x8xf32> -> vector<32x8xf32>
    %c0_21 = arith.constant 0 : index
    %c3 = arith.constant 3 : index
    %30 = vector.load %arg5[%c0_21, %c3] : memref<256x9xf32, #tpu.memory_space<vmem>>, vector<32x1xf32>
    %31 = vector.broadcast %30 : vector<32x1xf32> to vector<32x8xf32>
    %32 = arith.addf %29, %31 : vector<32x8xf32>
    %33 = arith.truncf %32 : vector<32x8xf32> to vector<32x8xbf16>
    %cst_22 = arith.constant 0.000000e+00 : bf16
    %34 = vector.broadcast %cst_22 : bf16 to vector<32x8xbf16>
    %35 = arith.maximumf %33, %34 : vector<32x8xbf16>
    %c2_23 = arith.constant 2 : index
    %c0_24 = arith.constant 0 : index
    %c0_25 = arith.constant 0 : index
    %36 = vector.load %arg4[%c2_23, %c0_24, %c0_25] : memref<7x64x128xbf16, #tpu.memory_space<vmem>>, vector<1x16x32xbf16>
    %37 = vector.shape_cast %36 : vector<1x16x32xbf16> to vector<16x32xbf16>
    %cst_26 = arith.constant dense<0.000000e+00> : vector<16x8xf32>
    %38 = tpu.matmul %37, %35, %cst_26 {dimension_numbers = #tpu.dot_dimension_numbers<[1], [0], [0], [1], [0, 0, 1, 1], [], []>} : vector<16x32xbf16>, vector<32x8xbf16>, vector<16x8xf32> -> vector<16x8xf32>
    %c0_27 = arith.constant 0 : index
    %c4 = arith.constant 4 : index
    %39 = vector.load %arg5[%c0_27, %c4] : memref<256x9xf32, #tpu.memory_space<vmem>>, vector<16x1xf32>
    %40 = vector.broadcast %39 : vector<16x1xf32> to vector<16x8xf32>
    %41 = arith.addf %38, %40 : vector<16x8xf32>
    %42 = arith.truncf %41 : vector<16x8xf32> to vector<16x8xbf16>
    %cst_28 = arith.constant 0.000000e+00 : bf16
    %43 = vector.broadcast %cst_28 : bf16 to vector<16x8xbf16>
    %44 = arith.maximumf %42, %43 : vector<16x8xbf16>
    %c3_29 = arith.constant 3 : index
    %c0_30 = arith.constant 0 : index
    %c0_31 = arith.constant 0 : index
    %45 = vector.load %arg4[%c3_29, %c0_30, %c0_31] : memref<7x64x128xbf16, #tpu.memory_space<vmem>>, vector<1x8x16xbf16>
    %46 = vector.shape_cast %45 : vector<1x8x16xbf16> to vector<8x16xbf16>
    %cst_32 = arith.constant dense<0.000000e+00> : vector<8x8xf32>
    %47 = tpu.matmul %46, %44, %cst_32 {dimension_numbers = #tpu.dot_dimension_numbers<[1], [0], [0], [1], [0, 0, 1, 1], [], []>} : vector<8x16xbf16>, vector<16x8xbf16>, vector<8x8xf32> -> vector<8x8xf32>
    %c0_33 = arith.constant 0 : index
    %c5 = arith.constant 5 : index
    %48 = vector.load %arg5[%c0_33, %c5] : memref<256x9xf32, #tpu.memory_space<vmem>>, vector<8x1xf32>
    %49 = vector.broadcast %48 : vector<8x1xf32> to vector<8x8xf32>
    %50 = arith.addf %47, %49 : vector<8x8xf32>
    %51 = arith.truncf %50 : vector<8x8xf32> to vector<8x8xbf16>
    %cst_34 = arith.constant 0.000000e+00 : bf16
    %52 = vector.broadcast %cst_34 : bf16 to vector<8x8xbf16>
    %53 = arith.maximumf %51, %52 : vector<8x8xbf16>
    %c4_35 = arith.constant 4 : index
    %c0_36 = arith.constant 0 : index
    %c0_37 = arith.constant 0 : index
    %54 = vector.load %arg4[%c4_35, %c0_36, %c0_37] : memref<7x64x128xbf16, #tpu.memory_space<vmem>>, vector<1x8x8xbf16>
    %55 = vector.shape_cast %54 : vector<1x8x8xbf16> to vector<8x8xbf16>
    %cst_38 = arith.constant dense<0.000000e+00> : vector<8x8xf32>
    %56 = tpu.matmul %55, %53, %cst_38 {dimension_numbers = #tpu.dot_dimension_numbers<[1], [0], [0], [1], [0, 0, 1, 1], [], []>} : vector<8x8xbf16>, vector<8x8xbf16>, vector<8x8xf32> -> vector<8x8xf32>
    %c0_39 = arith.constant 0 : index
    %c6 = arith.constant 6 : index
    %57 = vector.load %arg5[%c0_39, %c6] : memref<256x9xf32, #tpu.memory_space<vmem>>, vector<8x1xf32>
    %58 = vector.broadcast %57 : vector<8x1xf32> to vector<8x8xf32>
    %59 = arith.addf %56, %58 : vector<8x8xf32>
    %60 = arith.truncf %59 : vector<8x8xf32> to vector<8x8xbf16>
    %cst_40 = arith.constant 0.000000e+00 : bf16
    %61 = vector.broadcast %cst_40 : bf16 to vector<8x8xbf16>
    %62 = arith.maximumf %60, %61 : vector<8x8xbf16>
    %c5_41 = arith.constant 5 : index
    %c0_42 = arith.constant 0 : index
    %c0_43 = arith.constant 0 : index
    %63 = vector.load %arg4[%c5_41, %c0_42, %c0_43] : memref<7x64x128xbf16, #tpu.memory_space<vmem>>, vector<1x8x8xbf16>
    %64 = vector.shape_cast %63 : vector<1x8x8xbf16> to vector<8x8xbf16>
    %cst_44 = arith.constant dense<0.000000e+00> : vector<8x8xf32>
    %65 = tpu.matmul %64, %62, %cst_44 {dimension_numbers = #tpu.dot_dimension_numbers<[1], [0], [0], [1], [0, 0, 1, 1], [], []>} : vector<8x8xbf16>, vector<8x8xbf16>, vector<8x8xf32> -> vector<8x8xf32>
    %c0_45 = arith.constant 0 : index
    %c7 = arith.constant 7 : index
    %66 = vector.load %arg5[%c0_45, %c7] : memref<256x9xf32, #tpu.memory_space<vmem>>, vector<8x1xf32>
    %67 = vector.broadcast %66 : vector<8x1xf32> to vector<8x8xf32>
    %68 = arith.addf %65, %67 : vector<8x8xf32>
    %69 = arith.truncf %68 : vector<8x8xf32> to vector<8x8xbf16>
    %cst_46 = arith.constant 0.000000e+00 : bf16
    %70 = vector.broadcast %cst_46 : bf16 to vector<8x8xbf16>
    %71 = arith.maximumf %69, %70 : vector<8x8xbf16>
    %c6_47 = arith.constant 6 : index
    %c0_48 = arith.constant 0 : index
    %c0_49 = arith.constant 0 : index
    %72 = vector.load %arg4[%c6_47, %c0_48, %c0_49] : memref<7x64x128xbf16, #tpu.memory_space<vmem>>, vector<1x8x8xbf16>
    %73 = vector.shape_cast %72 : vector<1x8x8xbf16> to vector<8x8xbf16>
    %cst_50 = arith.constant dense<0.000000e+00> : vector<8x8xf32>
    %74 = tpu.matmul %73, %71, %cst_50 {dimension_numbers = #tpu.dot_dimension_numbers<[1], [0], [0], [1], [0, 0, 1, 1], [], []>} : vector<8x8xbf16>, vector<8x8xbf16>, vector<8x8xf32> -> vector<8x8xf32>
    %c0_51 = arith.constant 0 : index
    %c8 = arith.constant 8 : index
    %75 = vector.load %arg5[%c0_51, %c8] : memref<256x9xf32, #tpu.memory_space<vmem>>, vector<8x1xf32>
    %76 = vector.broadcast %75 : vector<8x1xf32> to vector<8x8xf32>
    %77 = arith.addf %74, %76 : vector<8x8xf32>
    %c0_52 = arith.constant 0 : index
    %c0_53 = arith.constant 0 : index
    %78 = vector.load %arg6[%c0_52, %c0_53] : memref<8x8xf32, #tpu.memory_space<vmem>>, vector<8x8xf32>
    tpu.vector_store %arg6[%c0_52, %c0_53], %77 {strides = array<i32>} : memref<8x8xf32, #tpu.memory_space<vmem>>, vector<8x8xf32>,
    return
  }
  func.func @transform_0(%arg0: i32) -> (i32, i32) {
    %c0_i32 = arith.constant 0 : i32
    %c0_i32_0 = arith.constant 0 : i32
    return %arg0, %c0_i32 : i32, i32
  }
  func.func @transform_1(%arg0: i32) -> (i32, i32) {
    %c0_i32 = arith.constant 0 : i32
    %c0_i32_0 = arith.constant 0 : i32
    %c0_i32_1 = arith.constant 0 : i32
    return %c0_i32, %c0_i32_0 : i32, i32
  }
  func.func @transform_2(%arg0: i32) -> (i32, i32) {
    %c0_i32 = arith.constant 0 : i32
    %c0_i32_0 = arith.constant 0 : i32
    %c0_i32_1 = arith.constant 0 : i32
    return %c0_i32, %c0_i32_0 : i32, i32
  }
  func.func @transform_3(%arg0: i32) -> (i32, i32, i32) {
    %c0_i32 = arith.constant 0 : i32
    %c0_i32_0 = arith.constant 0 : i32
    %c0_i32_1 = arith.constant 0 : i32
    %c0_i32_2 = arith.constant 0 : i32
    return %c0_i32, %c0_i32_0, %c0_i32_1 : i32, i32, i32
  }
  func.func @transform_4(%arg0: i32) -> (i32, i32) {
    %c0_i32 = arith.constant 0 : i32
    %c0_i32_0 = arith.constant 0 : i32
    %c0_i32_1 = arith.constant 0 : i32
    return %c0_i32, %c0_i32_0 : i32, i32
  }
  func.func @transform_5(%arg0: i32) -> (i32, i32) {
    %c0_i32 = arith.constant 0 : i32
    %c0_i32_0 = arith.constant 0 : i32
    return %c0_i32, %arg0 : i32, i32
  }
}

</mosaic_0001>

<bundles_post_ra>
// kernel: tpu_custom_call.1
= control target key start
LH: loop header
LB: loop body
LE: loop exit
PB: predicated region body
PF: predicated region fallthrough
CT: control target
= control target key end

     0   :  { %vm328_vm0 = vcmask 261120   ;;  %v1810_v3 = vmov 0   ;;  %s2381_s0 = inlined_call_operand.vmem [shape: f32[8,32], index: 0, kind: input, shape index: {}]   ;;  %s2382_s1 = inlined_call_operand.vmem [shape: bf16[256,32], index: 1, kind: input, shape index: {}]   ;;  %s2383_s2 = inlined_call_operand.vmem [shape: bf16[128,256], index: 2, kind: input, shape index: {}]   ;;  %s2384_s3 = inlined_call_operand.vmem [shape: bf16[7,64,128], index: 3, kind: input, shape index: {}]   ;;  %s2385_s4 = inlined_call_operand.vmem [shape: f32[256,9], index: 4, kind: input, shape index: {}]   ;;  %s2386_s5 = inlined_call_operand.hbm [shape: f32[8,8], index: 5, kind: output, shape index: {}]  }
   0x1   :  { %v22_v0 = vld [vmem:[%s2381_s0] sm:$0xff]  ;;  %1725 = vset.pattern.permute.xlu1 %v1810_v3  ;;  %1724 = vset.pattern.permute.xlu0 %v1810_v3  ;;  %v1740_v5 = vld [vmem:[%s2382_s1 + $0x8] sm:$0xff]   ;;  %v1741_v6 = vld [vmem:[%s2382_s1 + $0x10] sm:$0xff]  }
   0x2   :  { %v23_v1 = vpack.c.bf16 %v22_v0, %v22_v0  ;;  %v1739_v2 = vld [vmem:[%s2382_s1] sm:$0xff]   ;;  %v73_v9 = vld [vmem:[%s2385_s4 + $0x88] sm:$0xff]  ;;  %v74_v11 = vld [vmem:[%s2385_s4 + $0x90] sm:$0xff] }
   0x3   :  { %1611 = vmatprep.mubr.msk.bf16.mxu0 %vm328_vm0, %v1739_v2  ;;  %v72_v7 = vld [vmem:[%s2385_s4 + $0x80] sm:$0xff]  ;;  %v1884_v10 = vld [vmem:[%s2385_s4 + $0x8] sm:$0xff]  ;;  %v75_v12 = vld [vmem:[%s2385_s4 + $0x98] sm:$0xff] }
   0x4   :  { %1711 = vmatprep.subr.msk.bf16.mxu0 %vm328_vm0, %v23_v1  ;;  %v378_v4 = vsel %vm328_vm0, %v23_v1, 0  ;;  %v1875_v8 = vld [vmem:[%s2385_s4] sm:$0xff]  ;;  %170 = vperm.xlu0 %1724, %v72_v7   ;;  %v1742_v13 = vld [vmem:[%s2382_s1 + $0x18] sm:$0xff]   ;;  %v1904_v15 = vld [vmem:[%s2385_s4 + $0x10] sm:$0xff] }
   0x5   :  { %1610 = vmatpush3.bf16.xpose.msra.mxu0 %v378_v4  ;;  %90 = vperm.xlu1 %1725, %v1875_v8   ;;  %v1743_v14 = vld [vmem:[%s2382_s1 + $0x20] sm:$0xff]   ;;  %v1909_v16 = vld [vmem:[%s2385_s4 + $0x18] sm:$0xff]  ;;  %v77_v18 = vld [vmem:[%s2385_s4 + $0xa8] sm:$0xff] }
   0x6   :  { %v76_v17 = vld [vmem:[%s2385_s4 + $0xa0] sm:$0xff]  ;;  %v1744_v19 = vld [vmem:[%s2382_s1 + $0x28] sm:$0xff]   ;;  %v1745_v20 = vld [vmem:[%s2382_s1 + $0x30] sm:$0xff]  }
   0x7   :  { %v1930_v21 = vld [vmem:[%s2385_s4 + $0x20] sm:$0xff]  ;;  %v1935_v22 = vld [vmem:[%s2385_s4 + $0x28] sm:$0xff]  ;;  %v78_v23 = vld [vmem:[%s2385_s4 + $0xb0] sm:$0xff] }
   0x8   :  { %175 = vperm.xlu0 %1724, %v73_v9   ;;  %v79_v24 = vld [vmem:[%s2385_s4 + $0xb8] sm:$0xff]  ;;  %v1747_v26 = vld [vmem:[%s2382_s1 + $0x40] sm:$0xff]   ;;  %v1956_v27 = vld [vmem:[%s2385_s4 + $0x30] sm:$0xff] }
   0x9   :  { %95 = vperm.xlu1 %1725, %v1884_v10   ;;  %v1746_v25 = vld [vmem:[%s2382_s1 + $0x38] sm:$0xff]  }
   0xa   :  { %v1961_v28 = vld [vmem:[%s2385_s4 + $0x38] sm:$0xff] }
   0xc   :  { %1612 = vmatmul.mubr.msk.bf16.vlgmr.msra.gmra.mrb[0].mxu0 %vm328_vm0, %v1740_v5  ;;  %180 = vperm.xlu0 %1724, %v74_v11  }
   0xd   :  { %1615 = vmatprep.mubr.msk.bf16.mxu0 %vm328_vm0, %v1741_v6  ;;  %185 = vperm.xlu1 %1725, %v75_v12  }
  0x10   :  { %100 = vperm.xlu0 %1724, %v1904_v15  }
  0x11   :  { %105 = vperm.xlu1 %1725, %v1909_v16  }
  0x14   :  { %1616 = vmatmul.mubr.msk.bf16.gmra.mrb[4].mxu0 %vm328_vm0, %v1742_v13  ;;  %190 = vperm.xlu0 %1724, %v76_v17  }
  0x15   :  { %1619 = vmatprep.mubr.msk.bf16.mxu0 %vm328_vm0, %v1743_v14  ;;  %195 = vperm.xlu1 %1725, %v77_v18  }
  0x18   :  { %110 = vperm.xlu0 %1724, %v1930_v21  }
  0x19   :  { %115 = vperm.xlu1 %1725, %v1935_v22  }
  0x1c   :  { %1620 = vmatmul.mubr.msk.bf16.gmra.mrb[8].mxu0 %vm328_vm0, %v1744_v19  ;;  %200 = vperm.xlu0 %1724, %v78_v23  }
  0x1d   :  { %1623 = vmatprep.mubr.msk.bf16.mxu0 %vm328_vm0, %v1745_v20  ;;  %205 = vperm.xlu1 %1725, %v79_v24  }
  0x20   :  { %120 = vperm.xlu0 %1724, %v1956_v27  }
  0x21   :  { %125 = vperm.xlu1 %1725, %v1961_v28  }
  0x24   :  { %1624 = vmatmul.mubr.msk.bf16.gmra.mrb[12].mxu0 %vm328_vm0, %v1746_v25 }
  0x25   :  { %1627 = vmatprep.mubr.msk.bf16.mxu0 %vm328_vm0, %v1747_v26 }
  0x26   :  { %10 = vsyncpa [#allocation3], 0  ;;  %v80_v29 = vld [vmem:[%s2385_s4 + $0xc0] sm:$0xff]  ;;  %v81_v30 = vld [vmem:[%s2385_s4 + $0xc8] sm:$0xff]  ;;  %v1811_v26 = vmov 1   ;;  %vm1070_vm1 = vcmask 523264  }
  0x27   :  { %v1748_v31 = vld [vmem:[%s2382_s1 + $0x48] sm:$0xff]   ;;  %v1749_v32 = vld [vmem:[%s2382_s1 + $0x50] sm:$0xff]   ;;  %210 = vperm.xlu0 %1724, %v80_v29   ;;  %215 = vperm.xlu1 %1725, %v81_v30   ;;  %v1982_v33 = vld [vmem:[%s2385_s4 + $0x40] sm:$0xff]  ;;  %vm1815_vm2 = vmmov 0   ;;  %vm1204_vm3 = vcmask 130048   ;;  %vm1260_vm4 = vcmask 1043456  }
  0x28   :  { %v1987_v34 = vld [vmem:[%s2385_s4 + $0x48] sm:$0xff]  ;;  %v82_v35 = vld [vmem:[%s2385_s4 + $0xd0] sm:$0xff]  ;;  %v83_v36 = vld [vmem:[%s2385_s4 + $0xd8] sm:$0xff]  ;;  %vm1256_vm5 = vcmask 64512   ;;  %s1821_s13 = smov [#allocation2]  }
  0x29   :  { %v1750_v37 = vld [vmem:[%s2382_s1 + $0x58] sm:$0xff]   ;;  %v1751_v38 = vld [vmem:[%s2382_s1 + $0x60] sm:$0xff]   ;;  %v2008_v39 = vld [vmem:[%s2385_s4 + $0x50] sm:$0xff]  ;;  %s1419_s14 = sshll.u32 %s1821_s13, 4  ;;  %s1420_s14 = int_to_ptr.vmem [resolvable:$true] %s1419_s14 }
  0x2a   :  { %v2013_v40 = vld [vmem:[%s2385_s4 + $0x58] sm:$0xff]  ;;  %v84_v41 = vld [vmem:[%s2385_s4 + $0xe0] sm:$0xff]  ;;  %v85_v42 = vld [vmem:[%s2385_s4 + $0xe8] sm:$0xff]  ;;  %s1786_s15 = scalar_lea.vmem %s1420_s14, 128  ;;  %p1791_p1 = scmp.lt.s32.totalorder %s1420_s14, %s1420_s14 }
  0x2b   :  { %130 = vperm.xlu0 %1724, %v1982_v33   ;;  %135 = vperm.xlu1 %1725, %v1987_v34   ;;  %v1752_v43 = vld [vmem:[%s2382_s1 + $0x68] sm:$0xff]   ;;  %v1753_v44 = vld [vmem:[%s2382_s1 + $0x70] sm:$0xff]   ;;  %v2034_v45 = vld [vmem:[%s2385_s4 + $0x60] sm:$0xff]  ;;  %p1787_p0 = scmp.ne.s32.totalorder %s1420_s14, %s1786_s15  ;;  %p1792_p2 = scmp.lt.s32.totalorder %s1786_s15, %s1786_s15 }
  0x2c   :  { %1628 = vmatmul.mubr.msk.bf16.gmra.mrb[16].mxu0 %vm328_vm0, %v1748_v31  ;;  %v2039_v46 = vld [vmem:[%s2385_s4 + $0x68] sm:$0xff]  ;;  %v86_v47 = vld [vmem:[%s2385_s4 + $0xf0] sm:$0xff]  ;;  %v87_v48 = vld [vmem:[%s2385_s4 + $0xf8] sm:$0xff] }
  0x2d   :  { %1631 = vmatprep.mubr.msk.bf16.mxu0 %vm328_vm0, %v1749_v32  ;;  %v1754_v49 = vld [vmem:[%s2382_s1 + $0x78] sm:$0xff]   ;;  %v2057_v50 = vld [vmem:[%s2385_s4 + $0x70] sm:$0xff]  ;;  %v1757_v56 = vld [vmem:[%s2383_s2 + $0x4] ss:$8 sps:$4 sm:$0xff]   ;;  %p1793_p3 = por %p1792_p2, %p1791_p1 }
  0x2e   :  { %v2062_v51 = vld [vmem:[%s2385_s4 + $0x78] sm:$0xff]  ;;  %797 = vmatprep.mubr.bf16.mxu1 %v1757_v56 }
  0x2f   :  { %220 = vperm.xlu0 %1724, %v82_v35   ;;  %225 = vperm.xlu1 %1725, %v83_v36   ;;  %p1794_p4 = pnand %p1793_p3, %p1787_p0 }
  0x33   :  { %140 = vperm.xlu0 %1724, %v2008_v39   ;;  %145 = vperm.xlu1 %1725, %v2013_v40  }
  0x34   :  { %1632 = vmatmul.mubr.msk.bf16.gmra.mrb[20].mxu0 %vm328_vm0, %v1750_v37 }
  0x35   :  { %1635 = vmatprep.mubr.msk.bf16.mxu0 %vm328_vm0, %v1751_v38 }
  0x37   :  { %230 = vperm.xlu0 %1724, %v84_v41   ;;  %235 = vperm.xlu1 %1725, %v85_v42  }
  0x3b   :  { %150 = vperm.xlu0 %1724, %v2034_v45   ;;  %155 = vperm.xlu1 %1725, %v2039_v46  }
  0x3c   :  { %1636 = vmatmul.mubr.msk.bf16.gmra.mrb[24].mxu0 %vm328_vm0, %v1752_v43 }
  0x3d   :  { %1639 = vmatprep.mubr.msk.bf16.mxu0 %vm328_vm0, %v1753_v44 }
  0x3f   :  { %240 = vperm.xlu0 %1724, %v86_v47   ;;  %245 = vperm.xlu1 %1725, %v87_v48  }
  0x43   :  { %160 = vperm.xlu0 %1724, %v2057_v50   ;;  %165 = vperm.xlu1 %1725, %v2062_v51  }
  0x44   :  { %1640 = vmatmul.mubr.msk.bf16.gmra.mrb[28].mxu0 %vm328_vm0, %v1754_v49 }
  0x47   :  { %1726 = vset.pattern.permute.xlu0 %v1811_v26  ;;  %1727 = vset.pattern.permute.xlu1 %v1811_v26 }
  0x48   :  { %607 = vperm.xlu0 %1726, %v1875_v8   ;;  %612 = vperm.xlu1 %1727, %v1884_v10  }
  0x4c   :  { %622 = vperm.xlu0 %1726, %v1909_v16   ;;  %617 = vperm.xlu1 %1727, %v1904_v15  }
  0x50   :  { %632 = vperm.xlu0 %1726, %v1935_v22   ;;  %627 = vperm.xlu1 %1727, %v1930_v21  }
  0x54   :  { %642 = vperm.xlu0 %1726, %v1961_v28   ;;  %637 = vperm.xlu1 %1727, %v1956_v27  }
  0x58   :  { %652 = vperm.xlu0 %1726, %v1987_v34   ;;  %647 = vperm.xlu1 %1727, %v1982_v33  }
  0x5c   :  { %662 = vperm.xlu0 %1726, %v2013_v40   ;;  %657 = vperm.xlu1 %1727, %v2008_v39  }
  0x60   :  { %672 = vperm.xlu0 %1726, %v2039_v46   ;;  %667 = vperm.xlu1 %1727, %v2034_v45  }
  0x64   :  { %682 = vperm.xlu0 %1726, %v2062_v51   ;;  %677 = vperm.xlu1 %1727, %v2057_v50  }
  0x83   :  { %v2067_v52 = vpop.permute.xlu0 %170 }
  0x84   :  { %v91_v53 = vpop.permute.xlu1 %90 }
  0x87   :  { %v2069_v54 = vpop.permute.xlu0 %175 }
  0x88   :  { %v96_v55 = vpop.permute.xlu1 %95 }
  0x8b   :  { %v2074_v57 = vpop.permute.xlu0 %180 }
  0x8c   :  { %v2076_v58 = vpop.permute.xlu1 %185 }
  0x8f   :  { %v101_v59 = vpop.permute.xlu0 %100 }
  0x90   :  { %v106_v60 = vpop.permute.xlu1 %105 }
  0x93   :  { %v2078_v61 = vpop.permute.xlu0 %190 }
  0x94   :  { %v2080_v62 = vpop.permute.xlu1 %195 }
  0x97   :  { %v111_v63 = vpop.permute.xlu0 %110 }
  0x98   :  { %v116_v0 = vpop.permute.xlu1 %115 }
  0x9b   :  { %v2082_v1 = vpop.permute.xlu0 %200 }
  0x9c   :  { %v2084_v2 = vpop.permute.xlu1 %205 }
  0x9f   :  { %v121_v4 = vpop.permute.xlu0 %120 }
  0xa0   :  { %v126_v5 = vpop.permute.xlu1 %125 }
  0xa6   :  { %v2086_v6 = vpop.permute.xlu0 %210  ;;  %v2088_v7 = vpop.permute.xlu1 %215 }
  0xaa   :  { %v131_v9 = vpop.permute.xlu0 %130  ;;  %v136_v11 = vpop.permute.xlu1 %135 }
  0xae   :  { %v2090_v12 = vpop.permute.xlu0 %220  ;;  %v2092_v13 = vpop.permute.xlu1 %225 }
  0xb2   :  { %v141_v17 = vpop.permute.xlu0 %140  ;;  %v146_v19 = vpop.permute.xlu1 %145 }
  0xb6   :  { %v2108_v35 = vpop.permute.xlu0 %230  ;;  %v2110_v36 = vpop.permute.xlu1 %235 }
  0xba   :  { %v151_v49 = vpop.permute.xlu0 %150 }
  0xdf   :  { %v1613_v14 = vpop.f32.mrb[0].mxu0 }
  0xe0   :  { %v414_v18 = vpop.f32.mrb[1].mxu0  ;;  %v2094_v23 = vadd.f32 %v1613_v14, %v101_v59 }
  0xe1   :  { %v1614_v20 = vpop.f32.mrb[2].mxu0  ;;  %v2098_v29 = vadd.f32 %v414_v18, %v91_v53 }
  0xe2   :  { %v2096_v24 = vadd.f32 %v1614_v20, %v106_v60  ;;  %v417_v25 = vpop.f32.mrb[3].mxu0 }
  0xe3   :  { %v2100_v30 = vadd.f32 %v417_v25, %v96_v55  ;;  %v156_v55 = vpop.permute.xlu1 %155 }
  0xe4   :  { %v542_v31 = vpack.c.bf16 %v2096_v24, %v2094_v23 }
  0xe5   :  { %v541_v32 = vpack.c.bf16 %v2100_v30, %v2098_v29 }
  0xe6   :  { %v558_v29 = vmax.bf16 %v1810_v3, %v542_v31 }
  0xe7   :  { %v1617_v37 = vpop.f32.mrb[4].mxu0  ;;  %v2136_v18 = vpop.permute.xlu1 %245  ;;  %v557_v50 = vmax.bf16 %v1810_v3, %v541_v32 }
  0xe8   :  { %v430_v38 = vpop.f32.mrb[5].mxu0  ;;  %v2114_v42 = vadd.f32 %v1617_v37, %v121_v4 }
  0xe9   :  { %v1618_v41 = vpop.f32.mrb[6].mxu0  ;;  %v2118_v47 = vadd.f32 %v430_v38, %v111_v63 }
  0xea   :  { %v2116_v43 = vadd.f32 %v1618_v41, %v126_v5  ;;  %v433_v44 = vpop.f32.mrb[7].mxu0 }
  0xeb   :  { %v2120_v48 = vadd.f32 %v433_v44, %v116_v0  ;;  %v2130_v0 = vpop.permute.xlu0 %240  ;;  %v166_v38 = vpop.permute.xlu1 %165 }
  0xec   :  { %v544_v53 = vpack.c.bf16 %v2116_v43, %v2114_v42 }
  0xed   :  { %v543_v56 = vpack.c.bf16 %v2120_v48, %v2118_v47 }
  0xee   :  { %v560_v47 = vmax.bf16 %v1810_v3, %v544_v53 }
  0xef   :  { %v1621_v59 = vpop.f32.mrb[8].mxu0 }
  0xf0   :  { %v446_v60 = vpop.f32.mrb[9].mxu0  ;;  %v2132_v4 = vadd.f32 %v1621_v59, %v141_v17 }
  0xf1   :  { %v1622_v63 = vpop.f32.mrb[10].mxu0  ;;  %v2138_v20 = vadd.f32 %v446_v60, %v131_v9 }
  0xf2   :  { %v2134_v5 = vadd.f32 %v1622_v63, %v146_v19  ;;  %v449_v14 = vpop.f32.mrb[11].mxu0  ;;  %v161_v19 = vpop.permute.xlu0 %160 }
  0xf3   :  { %v2140_v25 = vadd.f32 %v449_v14, %v136_v11 }
  0xf4   :  { %v546_v26 = vpack.c.bf16 %v2134_v5, %v2132_v4  ;;  %v1755_v4 = vld [vmem:[%s2383_s2] ss:$8 sps:$4 sm:$0xff]   ;;  %v1758_v5 = vld [vmem:[%s2383_s2 + $0x14] ss:$8 sps:$4 sm:$0xff]  }
  0xf5   :  { %v545_v17 = vpack.c.bf16 %v2140_v25, %v2138_v20 }
  0xf6   :  { %v562_v20 = vmax.bf16 %v1810_v3, %v546_v26  ;;  %v1761_v26 = vld [vmem:[%s2383_s2 + $0x24] ss:$8 sps:$4 sm:$0xff]  }
  0xf7   :  { %v1625_v37 = vpop.f32.mrb[12].mxu0 }
  0xf8   :  { %v462_v9 = vpop.f32.mrb[13].mxu0  ;;  %v2150_v41 = vadd.f32 %v1625_v37, %v161_v19 }
  0xf9   :  { %v1626_v11 = vpop.f32.mrb[14].mxu0  ;;  %v2154_v44 = vadd.f32 %v462_v9, %v151_v49 }
  0xfa   :  { %v2152_v34 = vadd.f32 %v1626_v11, %v166_v38  ;;  %v465_v33 = vpop.f32.mrb[15].mxu0 }
  0xfb   :  { %v2156_v59 = vadd.f32 %v465_v33, %v156_v55 }
  0xfc   :  { %v548_v39 = vpack.c.bf16 %v2152_v34, %v2150_v41  ;;  %v1763_v41 = vld [vmem:[%s2383_s2 + $0x20] ss:$8 sps:$4 sm:$0xff]   ;;  %v1764_v34 = vld [vmem:[%s2383_s2 + $0x34] ss:$8 sps:$4 sm:$0xff]  }
  0xfd   :  { %v547_v40 = vpack.c.bf16 %v2156_v59, %v2154_v44  ;;  %v1766_v44 = vld [vmem:[%s2383_s2 + $0x30] ss:$8 sps:$4 sm:$0xff]   ;;  %v1767_v59 = vld [vmem:[%s2383_s2 + $0x44] ss:$8 sps:$4 sm:$0xff]  }
  0xff   :  { %v1629_v60 = vpop.f32.mrb[16].mxu0 }
 0x100   :  { %v478_v63 = vpop.f32.mrb[17].mxu0  ;;  %v487_v55 = vadd.f32 %v1629_v60, %v2074_v57 }
 0x101   :  { %v1630_v49 = vpop.f32.mrb[18].mxu0  ;;  %v479_v45 = vadd.f32 %v478_v63, %v2067_v52 }
 0x102   :  { %v490_v14 = vadd.f32 %v1630_v49, %v2076_v58  ;;  %v481_v46 = vpop.f32.mrb[19].mxu0 }
 0x103   :  { %v482_v37 = vadd.f32 %v481_v46, %v2069_v54 }
 0x104   :  { %v550_v19 = vpack.c.bf16 %v490_v14, %v487_v55 }
 0x105   :  { %v549_v9 = vpack.c.bf16 %v482_v37, %v479_v45 }
 0x106   :  { %v566_v57 = vmax.bf16 %v1810_v3, %v550_v19 }
 0x107   :  { %v1633_v38 = vpop.f32.mrb[20].mxu0  ;;  %v565_v11 = vmax.bf16 %v1810_v3, %v549_v9 }
 0x108   :  { %v494_v33 = vpop.f32.mrb[21].mxu0  ;;  %v503_v58 = vadd.f32 %v1633_v38, %v2082_v1 }
 0x109   :  { %v1634_v51 = vpop.f32.mrb[22].mxu0  ;;  %1516 = vmatprep.subr.bf16.mxu1 %v565_v11  ;;  %v495_v60 = vadd.f32 %v494_v33, %v2078_v61  ;;  %v559_v61 = vmax.bf16 %v1810_v3, %v543_v56  ;;  %v1772_v11 = vld [vmem:[%s2383_s2 + $0x50] ss:$8 sps:$4 sm:$0xff]   ;;  %v1773_v33 = vld [vmem:[%s2383_s2 + $0x64] ss:$8 sps:$4 sm:$0xff]  }
 0x10a   :  { %v506_v52 = vadd.f32 %v1634_v51, %v2084_v2  ;;  %v497_v54 = vpop.f32.mrb[23].mxu0  ;;  %1517 = vmatpush3.bf16.msra.mxu1 %v557_v50  ;;  %v1775_v50 = vld [vmem:[%s2383_s2 + $0x60] ss:$8 sps:$4 sm:$0xff]   ;;  %v1776_v51 = vld [vmem:[%s2383_s2 + $0x74] ss:$8 sps:$4 sm:$0xff]  }
 0x10b   :  { %v498_v63 = vadd.f32 %v497_v54, %v2080_v62  ;;  %1518 = vmatprep.subr.bf16.mxu1 %v566_v57  ;;  %v1778_v57 = vld [vmem:[%s2383_s2 + $0x70] ss:$8 sps:$4 sm:$0xff]  }
 0x10c   :  { %v552_v49 = vpack.c.bf16 %v506_v52, %v503_v58  ;;  %v1779_v58 = vld [vmem:[%s2384_s3] sm:$0xff]   ;;  %v1812_v52 = vmov 2  }
 0x10d   :  { %v551_v30 = vpack.c.bf16 %v498_v63, %v495_v60  ;;  %1659 = vmatprep.mubr.bf16.mxu0 %v1779_v58  ;;  %1728 = vset.pattern.permute.xlu1 %v1812_v52 }
 0x10e   :  { %1519 = vmatpush3.bf16.msra.mxu1 %v558_v29  ;;  %v568_v62 = vmax.bf16 %v1810_v3, %v552_v49  ;;  %1729 = vset.pattern.permute.xlu0 %v1812_v52  ;;  %v608_v29 = vpop.permute.xlu0 %607 }
 0x10f   :  { %v1637_v32 = vpop.f32.mrb[24].mxu0  ;;  %v567_v1 = vmax.bf16 %v1810_v3, %v551_v30  ;;  %896 = vperm.xlu1 %1728, %v1875_v8   ;;  %901 = vperm.xlu0 %1729, %v1884_v10   ;;  %v613_v30 = vpop.permute.xlu1 %612 }
 0x110   :  { %v510_v55 = vpop.f32.mrb[25].mxu0  ;;  %v519_v14 = vadd.f32 %v1637_v32, %v2090_v12 }
 0x111   :  { %v1638_v2 = vpop.f32.mrb[26].mxu0  ;;  %1520 = vmatprep.subr.bf16.mxu1 %v567_v1  ;;  %v511_v31 = vadd.f32 %v510_v55, %v2086_v6  ;;  %v561_v6 = vmax.bf16 %v1810_v3, %v545_v17 }
 0x112   :  { %v522_v23 = vadd.f32 %v1638_v2, %v2092_v13  ;;  %v513_v24 = vpop.f32.mrb[27].mxu0  ;;  %1521 = vmatpush3.bf16.msra.mxu1 %v559_v61 }
 0x113   :  { %v514_v46 = vadd.f32 %v513_v24, %v2088_v7  ;;  %1522 = vmatprep.subr.bf16.mxu1 %v568_v62  ;;  %906 = vperm.xlu1 %1728, %v1904_v15   ;;  %v618_v24 = vpop.permute.xlu1 %617 }
 0x114   :  { %v554_v45 = vpack.c.bf16 %v522_v23, %v519_v14  ;;  %916 = vperm.xlu0 %1729, %v1930_v21  }
 0x115   :  { %v553_v48 = vpack.c.bf16 %v514_v46, %v511_v31 }
 0x116   :  { %1523 = vmatpush3.bf16.msra.mxu1 %v560_v47  ;;  %v570_v7 = vmax.bf16 %v1810_v3, %v554_v45 }
 0x117   :  { %v1641_v56 = vpop.f32.mrb[28].mxu0  ;;  %v569_v12 = vmax.bf16 %v1810_v3, %v553_v48  ;;  %911 = vperm.xlu1 %1728, %v1909_v16  }
 0x118   :  { %v526_v37 = vpop.f32.mrb[29].mxu0  ;;  %v535_v19 = vadd.f32 %v1641_v56, %v2130_v0  ;;  %v563_v0 = vmax.bf16 %v1810_v3, %v547_v40  ;;  %v1770_v40 = vld [vmem:[%s2383_s2 + $0x54] ss:$8 sps:$4 sm:$0xff]   ;;  %926 = vperm.xlu0 %1729, %v1956_v27  }
 0x119   :  { %v1642_v13 = vpop.f32.mrb[30].mxu0  ;;  %1524 = vmatprep.subr.bf16.mxu1 %v569_v12  ;;  %v527_v53 = vadd.f32 %v526_v37, %v2108_v35 }
 0x11a   :  { %v538_v42 = vadd.f32 %v1642_v13, %v2136_v18  ;;  %v529_v43 = vpop.f32.mrb[31].mxu0  ;;  %1525 = vmatpush3.bf16.msra.mxu1 %v561_v6  ;;  %v1760_v18 = vld [vmem:[%s2383_s2 + $0x10] ss:$8 sps:$4 sm:$0xff]  }
 0x11b   :  { %v530_v9 = vadd.f32 %v529_v43, %v2110_v36  ;;  %1526 = vmatprep.subr.bf16.mxu1 %v570_v7  ;;  %v564_v36 = vmax.bf16 %v1810_v3, %v548_v39  ;;  %v1769_v39 = vld [vmem:[%s2383_s2 + $0x40] ss:$8 sps:$4 sm:$0xff]   ;;  %921 = vperm.xlu1 %1728, %v1935_v22  }
 0x11c   :  { %v556_v38 = vpack.c.bf16 %v538_v42, %v535_v19  ;;  %v628_v19 = vpop.permute.xlu1 %627 }
 0x11d   :  { %v555_v25 = vpack.c.bf16 %v530_v9, %v527_v53 }
 0x11e   :  { %1527 = vmatpush3.bf16.msra.mxu1 %v562_v20  ;;  %v572_v35 = vmax.bf16 %v1810_v3, %v556_v38 }
 0x11f   :  { %v571_v17 = vmax.bf16 %v1810_v3, %v555_v25  ;;  %931 = vperm.xlu1 %1728, %v1961_v28   ;;  %v623_v28 = vpop.permute.xlu0 %622 }
 0x121   :  { %1528 = vmatprep.subr.bf16.mxu1 %v571_v17 }
 0x122   :  { %1529 = vmatpush3.bf16.msra.mxu1 %v563_v0 }
 0x123   :  { %1530 = vmatprep.subr.bf16.mxu1 %v572_v35  ;;  %v633_v7 = vpop.permute.xlu0 %632 }
 0x126   :  { %1531 = vmatpush3.bf16.msra.mxu1 %v564_v36 }
 0x127   :  { %v643_v36 = vpop.permute.xlu0 %642 }
 0x129   :  { %798 = vmatmul.mubr.bf16.vlgmr.msra.gmra.mrb[0].mxu1 %v1755_v4  ;;  %v638_v4 = vpop.permute.xlu1 %637 }
 0x12a   :  { %805 = vmatprep.mubr.bf16.mxu1 %v1758_v5 }
 0x131   :  { %806 = vmatmul.mubr.bf16.gmra.mrb[4].mxu1 %v1760_v18 }
 0x132   :  { %813 = vmatprep.mubr.bf16.mxu1 %v1761_v26 }
 0x139   :  { %814 = vmatmul.mubr.bf16.gmra.mrb[8].mxu1 %v1763_v41 }
 0x13a   :  { %821 = vmatprep.mubr.bf16.mxu1 %v1764_v34 }
 0x141   :  { %822 = vmatmul.mubr.bf16.gmra.mrb[12].mxu1 %v1766_v44 }
 0x142   :  { %829 = vmatprep.mubr.bf16.mxu1 %v1767_v59 }
 0x149   :  { %830 = vmatmul.mubr.bf16.gmra.mrb[16].mxu1 %v1769_v39 }
 0x14a   :  { %837 = vmatprep.mubr.bf16.mxu1 %v1770_v40 }
 0x151   :  { %838 = vmatmul.mubr.bf16.gmra.mrb[20].mxu1 %v1772_v11 }
 0x152   :  { %845 = vmatprep.mubr.bf16.mxu1 %v1773_v33  ;;  %v653_v33 = vpop.permute.xlu0 %652 }
 0x159   :  { %846 = vmatmul.mubr.bf16.gmra.mrb[24].mxu1 %v1775_v50  ;;  %v648_v50 = vpop.permute.xlu1 %647 }
 0x15a   :  { %853 = vmatprep.mubr.bf16.mxu1 %v1776_v51 }
 0x161   :  { %854 = vmatmul.mubr.bf16.gmra.mrb[28].mxu1 %v1778_v57 }
 0x1fc   :  { %v1532_v54 = vpop.f32.mrb[0].mxu1 }
 0x1fd   :  { %v1533_v60 = vpop.f32.mrb[1].mxu1 }
 0x1fe   :  { %v1534_v63 = vadd.f32 %v1533_v60, %v1532_v54  ;;  %v1535_v49 = vpop.f32.mrb[2].mxu1 }
 0x1ff   :  { %v1536_v8 = vpop.f32.mrb[3].mxu1 }
 0x200   :  { %v1537_v32 = vadd.f32 %v1536_v8, %v1535_v49  ;;  %v800_v1 = vadd.f32 %v1534_v63, %v608_v29 }
 0x202   :  { %v803_v55 = vadd.f32 %v1537_v32, %v613_v30  ;;  %v663_v30 = vpop.permute.xlu0 %662  ;;  %v658_v32 = vpop.permute.xlu1 %657 }
 0x204   :  { %v862_v61 = vpack.c.bf16 %v803_v55, %v800_v1  ;;  %v1538_v21 = vpop.f32.mrb[4].mxu1 }
 0x205   :  { %v1539_v2 = vpop.f32.mrb[5].mxu1 }
 0x206   :  { %v1540_v62 = vadd.f32 %v1539_v2, %v1538_v21  ;;  %v1541_v14 = vpop.f32.mrb[6].mxu1  ;;  %v870_v27 = vmax.bf16 %v1810_v3, %v862_v61 }
 0x207   :  { %v1542_v22 = vpop.f32.mrb[7].mxu1 }
 0x208   :  { %v1543_v23 = vadd.f32 %v1542_v22, %v1541_v14  ;;  %1643 = vmatprep.subr.bf16.mxu0 %v870_v27  ;;  %v808_v31 = vadd.f32 %v1540_v62, %v618_v24  ;;  %v668_v24 = vpop.permute.xlu1 %667 }
 0x209   :  { %1644 = vmatpush3.bf16.msra.mxu0 %v870_v27 }
 0x20a   :  { %v811_v46 = vadd.f32 %v1543_v23, %v623_v28  ;;  %v673_v28 = vpop.permute.xlu0 %672 }
 0x20c   :  { %v863_v45 = vpack.c.bf16 %v811_v46, %v808_v31  ;;  %v1544_v47 = vpop.f32.mrb[8].mxu1 }
 0x20d   :  { %v1545_v48 = vpop.f32.mrb[9].mxu1 }
 0x20e   :  { %v1546_v56 = vadd.f32 %v1545_v48, %v1544_v47  ;;  %v1547_v12 = vpop.f32.mrb[10].mxu1  ;;  %v871_v37 = vmax.bf16 %v1810_v3, %v863_v45 }
 0x20f   :  { %v1548_v6 = vpop.f32.mrb[11].mxu1 }
 0x210   :  { %v1549_v13 = vadd.f32 %v1548_v6, %v1547_v12  ;;  %1645 = vmatprep.subr.bf16.mxu0 %v871_v37  ;;  %v816_v42 = vadd.f32 %v1546_v56, %v628_v19  ;;  %v678_v19 = vpop.permute.xlu1 %677 }
 0x211   :  { %1646 = vmatpush3.bf16.msra.mxu0 %v871_v37 }
 0x212   :  { %v819_v43 = vadd.f32 %v1549_v13, %v633_v7  ;;  %v683_v7 = vpop.permute.xlu0 %682 }
 0x214   :  { %v864_v53 = vpack.c.bf16 %v819_v43, %v816_v42  ;;  %v1550_v9 = vpop.f32.mrb[12].mxu1 }
 0x215   :  { %v1551_v38 = vpop.f32.mrb[13].mxu1 }
 0x216   :  { %v1552_v20 = vadd.f32 %v1551_v38, %v1550_v9  ;;  %v1553_v25 = vpop.f32.mrb[14].mxu1  ;;  %v872_v17 = vmax.bf16 %v1810_v3, %v864_v53  ;;  %v1780_v38 = vld [vmem:[%s2384_s3 + $0x8] sm:$0xff]  }
 0x217   :  { %v1554_v0 = vpop.f32.mrb[15].mxu1 }
 0x218   :  { %v1555_v35 = vadd.f32 %v1554_v0, %v1553_v25  ;;  %1647 = vmatprep.subr.bf16.mxu0 %v872_v17  ;;  %v824_v5 = vadd.f32 %v1552_v20, %v638_v4  ;;  %v1781_v20 = vld [vmem:[%s2384_s3 + $0x10] sm:$0xff]   ;;  %v1782_v25 = vld [vmem:[%s2384_s3 + $0x18] sm:$0xff]   ;;  %v2302_v0 = vld [vmem:[%s2385_s4] sm:$0xff] }
 0x219   :  { %1648 = vmatpush3.bf16.msra.mxu0 %v872_v17  ;;  %v1783_v17 = vld [vmem:[%s2384_s3 + $0x20] sm:$0xff]  }
 0x21a   :  { %v827_v18 = vadd.f32 %v1555_v35, %v643_v36  ;;  %v1813_v35 = vmov 3   ;;  %v897_v36 = vpop.permute.xlu1 %896 }
 0x21b   :  { %1731 = vset.pattern.permute.xlu1 %v1813_v35  ;;  %1730 = vset.pattern.permute.xlu0 %v1813_v35 }
 0x21c   :  { %v865_v26 = vpack.c.bf16 %v827_v18, %v824_v5  ;;  %v1556_v41 = vpop.f32.mrb[16].mxu1  ;;  %1047 = vperm.xlu1 %1731, %v1884_v10   ;;  %1042 = vperm.xlu0 %1730, %v2302_v0   ;;  %v902_v18 = vpop.permute.xlu0 %901 }
 0x21d   :  { %v1557_v34 = vpop.f32.mrb[17].mxu1 }
 0x21e   :  { %v1558_v44 = vadd.f32 %v1557_v34, %v1556_v41  ;;  %v1559_v59 = vpop.f32.mrb[18].mxu1  ;;  %v873_v39 = vmax.bf16 %v1810_v3, %v865_v26  ;;  %v907_v4 = vpop.permute.xlu1 %906 }
 0x21f   :  { %v1560_v40 = vpop.f32.mrb[19].mxu1 }
 0x220   :  { %v1561_v11 = vadd.f32 %v1560_v40, %v1559_v59  ;;  %1649 = vmatprep.subr.bf16.mxu0 %v873_v39  ;;  %v832_v51 = vadd.f32 %v1558_v44, %v648_v50  ;;  %1052 = vperm.xlu1 %1731, %v1904_v15  }
 0x221   :  { %1650 = vmatpush3.bf16.msra.mxu0 %v873_v39  ;;  %1057 = vperm.xlu0 %1730, %v1909_v16  }
 0x222   :  { %v835_v57 = vadd.f32 %v1561_v11, %v653_v33  ;;  %v912_v5 = vpop.permute.xlu1 %911  ;;  %v917_v11 = vpop.permute.xlu0 %916 }
 0x224   :  { %v866_v58 = vpack.c.bf16 %v835_v57, %v832_v51  ;;  %v1562_v52 = vpop.f32.mrb[20].mxu1 }
 0x225   :  { %v1563_v54 = vpop.f32.mrb[21].mxu1 }
 0x226   :  { %v1564_v60 = vadd.f32 %v1563_v54, %v1562_v52  ;;  %v1565_v63 = vpop.f32.mrb[22].mxu1  ;;  %v874_v49 = vmax.bf16 %v1810_v3, %v866_v58  ;;  %v922_v44 = vpop.permute.xlu1 %921 }
 0x227   :  { %v1566_v29 = vpop.f32.mrb[23].mxu1  ;;  %v927_v52 = vpop.permute.xlu0 %926 }
 0x228   :  { %v1567_v8 = vadd.f32 %v1566_v29, %v1565_v63  ;;  %1651 = vmatprep.subr.bf16.mxu0 %v874_v49  ;;  %v840_v1 = vadd.f32 %v1564_v60, %v658_v32 }
 0x229   :  { %1652 = vmatpush3.bf16.msra.mxu0 %v874_v49 }
 0x22a   :  { %v843_v55 = vadd.f32 %v1567_v8, %v663_v30  ;;  %v932_v16 = vpop.permute.xlu1 %931 }
 0x22c   :  { %v867_v61 = vpack.c.bf16 %v843_v55, %v840_v1  ;;  %v1568_v21 = vpop.f32.mrb[24].mxu1 }
 0x22d   :  { %v1569_v2 = vpop.f32.mrb[25].mxu1 }
 0x22e   :  { %v1570_v62 = vadd.f32 %v1569_v2, %v1568_v21  ;;  %v1571_v14 = vpop.f32.mrb[26].mxu1  ;;  %v875_v27 = vmax.bf16 %v1810_v3, %v867_v61  ;;  %v1784_v21 = vld [vmem:[%s2384_s3 + $0x28] sm:$0xff]   ;;  %v1814_v2 = vmov 0.0  }
 0x22f   :  { %v1572_v22 = vpop.f32.mrb[27].mxu1  ;;  %1687 = vmatprep.subr.bf16.mxu1 %v1814_v2  ;;  %1689 = vmatprep.mubr.msk.bf16.mxu1 %vm1815_vm2, %v1814_v2 }
 0x230   :  { %v1573_v23 = vadd.f32 %v1572_v22, %v1571_v14  ;;  %1653 = vmatprep.subr.bf16.mxu0 %v875_v27  ;;  %v848_v31 = vadd.f32 %v1570_v62, %v668_v24  ;;  %v1134_v62 = vld [vmem:[%s2385_s4 + $0x8] sm:$0xff]  ;;  %v1816_v14 = vmov 4  }
 0x231   :  { %1654 = vmatpush3.bf16.msra.mxu0 %v875_v27  ;;  %1732 = vset.pattern.permute.xlu1 %v1816_v14 }
 0x232   :  { %v851_v46 = vadd.f32 %v1573_v23, %v673_v28  ;;  %1733 = vset.pattern.permute.xlu0 %v1816_v14  ;;  %1137 = vperm.xlu1 %1732, %v2302_v0   ;;  %v1497_v14 = vld [vmem:[%s2384_s3 + $0xc0] sm:$0xf] }
 0x233   :  { %1142 = vperm.xlu0 %1733, %v1134_v62  }
 0x234   :  { %v868_v45 = vpack.c.bf16 %v851_v46, %v848_v31  ;;  %v1574_v47 = vpop.f32.mrb[28].mxu1 }
 0x235   :  { %v1575_v48 = vpop.f32.mrb[29].mxu1 }
 0x236   :  { %v1576_v56 = vadd.f32 %v1575_v48, %v1574_v47  ;;  %v1577_v12 = vpop.f32.mrb[30].mxu1  ;;  %v876_v37 = vmax.bf16 %v1810_v3, %v868_v45 }
 0x237   :  { %v1578_v6 = vpop.f32.mrb[31].mxu1 }
 0x238   :  { %v1579_v13 = vadd.f32 %v1578_v6, %v1577_v12  ;;  %1655 = vmatprep.subr.bf16.mxu0 %v876_v37  ;;  %v856_v42 = vadd.f32 %v1576_v56, %v678_v19  ;;  %v1785_v19 = vld [vmem:[%s2384_s3 + $0x40] sm:$0xff]  }
 0x239   :  { %1656 = vmatpush3.bf16.msra.mxu0 %v876_v37 }
 0x23a   :  { %v859_v43 = vadd.f32 %v1579_v13, %v683_v7 }
 0x23c   :  { %v869_v53 = vpack.c.bf16 %v859_v43, %v856_v42  ;;  %v1817_v42 = vmov 5  }
 0x23d   :  { %1734 = vset.pattern.permute.xlu1 %v1817_v42 }
 0x23e   :  { %v877_v9 = vmax.bf16 %v1810_v3, %v869_v53  ;;  %1201 = vperm.xlu1 %1734, %v2302_v0  }
 0x240   :  { %1657 = vmatprep.subr.bf16.mxu0 %v877_v9 }
 0x241   :  { %1658 = vmatpush3.bf16.msra.mxu0 %v877_v9 }
 0x244   :  { %1660 = vmatmul.mubr.bf16.vlgmr.msra.gmra.mrb[32].mxu0 %v1780_v38 }
 0x245   :  { %1663 = vmatprep.mubr.bf16.mxu0 %v1781_v20 }
 0x24c   :  { %1664 = vmatmul.mubr.bf16.gmra.mrb[36].mxu0 %v1782_v25 }
 0x24d   :  { %1675 = vmatprep.mubr.msk.bf16.mxu0 %vm1070_vm1, %v1783_v17 }
 0x29b   :  { %v1048_v27 = vpop.permute.xlu1 %1047  ;;  %v1043_v22 = vpop.permute.xlu0 %1042 }
 0x29f   :  { %v1053_v23 = vpop.permute.xlu1 %1052 }
 0x2a0   :  { %v1058_v24 = vpop.permute.xlu0 %1057 }
 0x2b1   :  { %v1138_v43 = vpop.permute.xlu1 %1137 }
 0x2b2   :  { %v1143_v9 = vpop.permute.xlu0 %1142 }
 0x317   :  { %v1661_v26 = vpop.f32.mrb[32].mxu0 }
 0x318   :  { %v992_v41 = vpop.f32.mrb[33].mxu0  ;;  %v1001_v59 = vadd.f32 %v1661_v26, %v907_v4  ;;  %v1202_v26 = vpop.permute.xlu1 %1201 }
 0x319   :  { %v1662_v34 = vpop.f32.mrb[34].mxu0  ;;  %v993_v33 = vadd.f32 %v992_v41, %v897_v36 }
 0x31a   :  { %v1004_v39 = vadd.f32 %v1662_v34, %v912_v5  ;;  %v995_v40 = vpop.f32.mrb[35].mxu0  ;;  %v1491_v5 = vld [vmem:[%s2384_s3 + $0x60] sm:$0xf] }
 0x31b   :  { %v996_v10 = vadd.f32 %v995_v40, %v902_v18  ;;  %v1818_v18 = vmov 6  }
 0x31c   :  { %v1024_v50 = vpack.c.bf16 %v1004_v39, %v1001_v59  ;;  %1735 = vset.pattern.permute.xlu1 %v1818_v18 }
 0x31d   :  { %v1023_v51 = vpack.c.bf16 %v996_v10, %v993_v33  ;;  %1253 = vperm.xlu1 %1735, %v2302_v0   ;;  %v1493_v10 = vld [vmem:[%s2384_s3 + $0x80] sm:$0xf] }
 0x31e   :  { %v1028_v60 = vmax.bf16 %v1810_v3, %v1024_v50  ;;  %v1819_v50 = vmov 7  }
 0x31f   :  { %v1665_v57 = vpop.f32.mrb[36].mxu0  ;;  %v1027_v15 = vmax.bf16 %v1810_v3, %v1023_v51  ;;  %1736 = vset.pattern.permute.xlu0 %v1819_v50 }
 0x320   :  { %v1008_v58 = vpop.f32.mrb[37].mxu0  ;;  %v1017_v63 = vadd.f32 %v1665_v57, %v927_v52  ;;  %1309 = vperm.xlu0 %1736, %v2302_v0  }
 0x321   :  { %v1666_v54 = vpop.f32.mrb[38].mxu0  ;;  %1667 = vmatprep.subr.bf16.mxu0 %v1027_v15  ;;  %v1009_v8 = vadd.f32 %v1008_v58, %v917_v11 }
 0x322   :  { %v1020_v49 = vadd.f32 %v1666_v54, %v932_v16  ;;  %v1011_v29 = vpop.f32.mrb[39].mxu0  ;;  %1668 = vmatpush3.bf16.msra.mxu0 %v1027_v15 }
 0x323   :  { %v1012_v30 = vadd.f32 %v1011_v29, %v922_v44  ;;  %1669 = vmatprep.subr.bf16.mxu0 %v1028_v60  ;;  %v1820_v29 = vmov 8  }
 0x324   :  { %v1026_v32 = vpack.c.bf16 %v1020_v49, %v1017_v63  ;;  %v1495_v49 = vld [vmem:[%s2384_s3 + $0xa0] sm:$0xf]  ;;  %1737 = vset.pattern.permute.xlu1 %v1820_v29  ;;  %1738 = vset.pattern.permute.xlu0 %v1820_v29 }
 0x325   :  { %v1025_v1 = vpack.c.bf16 %v1012_v30, %v1009_v8  ;;  %1363 = vperm.xlu1 %1737, %v2302_v0  }
 0x326   :  { %1670 = vmatpush3.bf16.msra.mxu0 %v1028_v60  ;;  %v1030_v61 = vmax.bf16 %v1810_v3, %v1026_v32 }
 0x327   :  { %v1029_v55 = vmax.bf16 %v1810_v3, %v1025_v1 }
 0x329   :  { %1671 = vmatprep.subr.bf16.mxu0 %v1029_v55 }
 0x32a   :  { %1672 = vmatpush3.bf16.msra.mxu0 %v1029_v55 }
 0x32b   :  { %1673 = vmatprep.subr.bf16.mxu0 %v1030_v61 }
 0x32e   :  { %1674 = vmatpush3.bf16.msra.mxu0 %v1030_v61 }
 0x32f   :  { %1679 = vmatprep.subr.bf16.mxu0 %v1814_v2 }
 0x331   :  { %1676 = vmatmul.mubr.msk.bf16.vlgmr.msra.gmra.mrb[40].mxu0 %vm1070_vm1, %v1784_v21 }
 0x332   :  { %1683 = vmatprep.mubr.msk.bf16.mxu0 %vm1815_vm2, %v1814_v2 }
 0x39c   :  { %v1254_v51 = vpop.permute.xlu1 %1253 }
 0x39f   :  { %v1310_v8 = vpop.permute.xlu0 %1309 }
 0x404   :  { %v1677_v28 = vpop.f32.mrb[40].mxu0 }
 0x405   :  { %v1111_v31 = vpop.f32.mrb[41].mxu0  ;;  %v1120_v45 = vadd.f32 %v1677_v28, %v1053_v23 }
 0x406   :  { %v1678_v46 = vpop.f32.mrb[42].mxu0  ;;  %v1112_v56 = vadd.f32 %v1111_v31, %v1043_v22 }
 0x407   :  { %v1123_v47 = vadd.f32 %v1678_v46, %v1058_v24  ;;  %v1114_v48 = vpop.f32.mrb[43].mxu0 }
 0x408   :  { %v1115_v12 = vadd.f32 %v1114_v48, %v1048_v27  ;;  %v1364_v27 = vpop.permute.xlu1 %1363 }
 0x409   :  { %v1127_v37 = vpack.c.bf16 %v1123_v47, %v1120_v45 }
 0x40a   :  { %v1126_v6 = vpack.c.bf16 %v1115_v12, %v1112_v56 }
 0x40b   :  { %v1129_v7 = vmax.bf16 %v1810_v3, %v1127_v37 }
 0x40c   :  { %v1128_v13 = vmax.bf16 %v1810_v3, %v1126_v6 }
 0x40e   :  { %1680 = vmatpush3.bf16.msra.mxu0 %v1128_v13 }
 0x40f   :  { %1681 = vmatprep.subr.bf16.mxu0 %v1814_v2 }
 0x412   :  { %1682 = vmatpush3.bf16.msra.mxu0 %v1129_v7 }
 0x413   :  { %1693 = vmatprep.subr.bf16.mxu0 %v1814_v2 }
 0x415   :  { %1684 = vmatmul.mubr.msk.bf16.vlgmr.msra.gmra.mrb[44].mxu0 %vm328_vm0, %v1785_v19 }
 0x416   :  { %1695 = vmatprep.mubr.msk.bf16.mxu0 %vm1815_vm2, %v1814_v2 }
 0x4e8   :  { %v1187_v53 = vpop.f32.mrb[44].mxu0 }
 0x4e9   :  { %v1685_v38 = vpop.f32.mrb[45].mxu0  ;;  %v1188_v25 = vadd.f32 %v1187_v53, %v1138_v43 }
 0x4ea   :  { %v1190_v20 = vpop.f32.mrb[46].mxu0 }
 0x4eb   :  { %v1191_v17 = vadd.f32 %v1190_v20, %v1143_v9  ;;  %v1686_v35 = vpop.f32.mrb[47].mxu0 }
 0x4ed   :  { %v1194_v36 = vpack.c.bf16 %v1191_v17, %v1188_v25 }
 0x4ef   :  { %v1195_v4 = vmax.bf16 %v1810_v3, %v1194_v36 }
 0x4f1   :  { %1688 = vmatpush3.bf16.msra.mxu1 %v1195_v4 }
 0x4f2   :  { %1699 = vmatprep.subr.bf16.mxu1 %v1814_v2 }
 0x4f4   :  { %1690 = vmatmul.mubr.msk.bf16.vlgmr.msra.gmra.mrb[32].mxu1 %vm1204_vm3, %v1491_v5 }
 0x4f5   :  { %1701 = vmatprep.mubr.msk.bf16.mxu1 %vm1815_vm2, %v1814_v2 }
 0x5c7   :  { %v1242_v41 = vpop.f32.mrb[32].mxu1 }
 0x5c8   :  { %v1243_v34 = vadd.f32 %v1242_v41, %v1202_v26  ;;  %v1691_v44 = vpop.f32.mrb[33].mxu1 }
 0x5c9   :  { %v1245_v59 = vpop.f32.mrb[34].mxu1 }
 0x5ca   :  { %v1248_v39 = vpack.c.bf16 %v1243_v34, %v1243_v34  ;;  %v1692_v40 = vpop.f32.mrb[35].mxu1 }
 0x5cc   :  { %v1249_v11 = vmax.bf16 %v1810_v3, %v1248_v39 }
 0x5ce   :  { %v1262_v33 = vsel %vm1260_vm4, %v1249_v11, 0 }
 0x5cf   :  { %1694 = vmatpush3.bf16.msra.mxu0 %v1262_v33 }
 0x5d0   :  { %1705 = vmatprep.subr.bf16.mxu0 %v1814_v2 }
 0x5d2   :  { %1696 = vmatmul.mubr.msk.bf16.vlgmr.msra.gmra.mrb[48].mxu0 %vm1256_vm5, %v1493_v10 }
 0x5d3   :  { %1707 = vmatprep.mubr.msk.bf16.mxu0 %vm1815_vm2, %v1814_v2 }
 0x6a5   :  { %v1298_v57 = vpop.f32.mrb[48].mxu0 }
 0x6a6   :  { %v1299_v15 = vadd.f32 %v1298_v57, %v1254_v51  ;;  %v1697_v16 = vpop.f32.mrb[49].mxu0 }
 0x6a7   :  { %v1301_v58 = vpop.f32.mrb[50].mxu0 }
 0x6a8   :  { %v1304_v52 = vpack.c.bf16 %v1299_v15, %v1299_v15  ;;  %v1698_v54 = vpop.f32.mrb[51].mxu0 }
 0x6aa   :  { %v1305_v60 = vmax.bf16 %v1810_v3, %v1304_v52 }
 0x6ac   :  { %v1316_v63 = vsel %vm1260_vm4, %v1305_v60, 0 }
 0x6ad   :  { %1700 = vmatpush3.bf16.msra.mxu1 %v1316_v63 }
 0x6b0   :  { %1702 = vmatmul.mubr.msk.bf16.vlgmr.msra.gmra.mrb[36].mxu1 %vm1256_vm5, %v1495_v49 }
 0x783   :  { %v1352_v30 = vpop.f32.mrb[36].mxu1 }
 0x784   :  { %v1703_v32 = vpop.f32.mrb[37].mxu1  ;;  %v1353_v1 = vadd.f32 %v1352_v30, %v1310_v8 }
 0x785   :  { %v1355_v55 = vpop.f32.mrb[38].mxu1 }
 0x786   :  { %v1358_v61 = vpack.c.bf16 %v1353_v1, %v1353_v1  ;;  %v1704_v21 = vpop.f32.mrb[39].mxu1 }
 0x788   :  { %v1359_v2 = vmax.bf16 %v1810_v3, %v1358_v61 }
 0x78a   :  { %v1370_v62 = vsel %vm1260_vm4, %v1359_v2, 0 }
 0x78b   :  { %1706 = vmatpush3.bf16.msra.mxu0 %v1370_v62 }
 0x78e   :  { %1708 = vmatmul.mubr.msk.bf16.vlgmr.msra.gmra.mrb[52].mxu0 %vm1256_vm5, %v1497_v14 }
 0x861   :  { %v1406_v0 = vpop.f32.mrb[52].mxu0 }
 0x862   :  { %v1709_v22 = vpop.f32.mrb[53].mxu0  ;;  %v1407_v23 = vadd.f32 %v1406_v0, %v1364_v27 }
 0x863   :  { %v1409_v28 = vpop.f32.mrb[54].mxu0 }
 0x864   :  { %1412 = vst.msk [vmem:[#allocation2] sm:$0xff] %vm1256_vm5, %v1407_v23  ;;  %v1710_v3 = vpop.f32.mrb[55].mxu0 }
 0x865   :  { %1797 = shalt.err (!%p1794_p4)
}
 0x866   :  { %s1798_s17 = scalar_lea.hbm %s2386_s5, 128 }
 0x867   :  { %p1799_p5 = scmp.ne.s32.totalorder %s2386_s5, %s1798_s17  ;;  %p1802_p6 = scmp.lt.u32.totalorder %s1798_s17, %s2386_s5 }
 0x869   :  { %p1804_p7 = pnand %p1802_p6, %p1799_p5 }
 0x86b   :  { %1807 = shalt.err (!%p1804_p7)
}
 0x86c   :  { %1422 = dma.vmem_to_hbm [thread:$0]  %s1420_s14, 128, %s2386_s5, [#allocation3]  }
 0x86d   :  { %1808 = dma.done.wait [#allocation3], 128  }
 0x86e   :  { %1809 = vsyncadd [#allocation3], 4294967168 }
 0x86f   :  { %1426 = vsyncpa [#allocation3], 1 }

</bundles_post_ra>
